<compile_context>
chip_gen: v5e
topology: v5e:2x2
jax: 0.10.0
libtpu: 0.0.40
codegen_flags: <defaults>
</compile_context>

<pallas_src>
import functools

import numpy as np
import jax
import jax.numpy as jnp
from jax import lax
from jax.experimental import pallas as pl
from jax.experimental.pallas import tpu as pltpu

_LANE = 512                             # lane width for the (rare) ragged fallback path
_TARGET_TILE_BYTES = 4 * 1024 * 1024    # ~4 MiB per tile (dtype-aware row count)
_VMEM_LIMIT_BYTES = 48 * 1024 * 1024    # fits v7x (64 MiB) with headroom; fine on v5e/v6e


def _round_up(a, b):
    return ((a + b - 1) // b) * b


def _mix32_py(v):
    """lowbias32-style 32-bit finalizer on Python ints (host-side seed pre-mix)."""
    v &= 0xFFFFFFFF
    v ^= v >> 16
    v = (v * 0x7FEB352D) & 0xFFFFFFFF
    v ^= v >> 15
    v = (v * 0x846CA68B) & 0xFFFFFFFF
    v ^= v >> 16
    return v


def _hash_u32(counter, mseed):
    """lowbias32 mixer on uint32 vectors; mseed is already finalizer-mixed on host."""
    h = counter ^ mseed
    h = h ^ (h >> 16)
    h = h * np.uint32(0x7FEB352D)
    h = h ^ (h >> 15)
    h = h * np.uint32(0x846CA68B)
    h = h ^ (h >> 16)
    return h


def _dropout_kernel(seed_ref, x_ref, o_ref, *, threshold16, scale, block_rows):
    rows, cols = x_ref.shape
    mseed = seed_ref[0].astype(jnp.uint32)                     # pre-mixed, 31-bit
    pid = lax.convert_element_type(pl.program_id(0), jnp.uint32)
    thr = np.uint32(threshold16)
    scale32 = np.float32(scale)

    if cols % 256 == 0:
        # Two keep decisions per 32-bit hash: low 16 bits drive the left lane-half,
        # high 16 bits drive the right lane-half (both halves 128-lane aligned).
        half = cols // 2
        row = lax.broadcasted_iota(jnp.int32, (rows, half), 0)
        col = lax.broadcasted_iota(jnp.int32, (rows, half), 1)
        idx = (row * half + col).astype(jnp.uint32)            # in-tile id (fits int32)
        counter = pid * np.uint32(block_rows * half) + idx     # global id, wraps mod 2^32
        h = _hash_u32(counter, mseed)
        keep_lo = (h & np.uint32(0xFFFF)) >= thr
        keep_hi = (h >> 16) >= thr
        xl = x_ref[:, :half].astype(jnp.float32) * scale32
        xr = x_ref[:, half:].astype(jnp.float32) * scale32
        o_ref[:, :half] = jnp.where(keep_lo, xl, 0.0).astype(o_ref.dtype)
        o_ref[:, half:] = jnp.where(keep_hi, xr, 0.0).astype(o_ref.dtype)
    else:
        # Fallback: one decision per hash (only hit when cols == 128).
        row = lax.broadcasted_iota(jnp.int32, (rows, cols), 0)
        col = lax.broadcasted_iota(jnp.int32, (rows, cols), 1)
        idx = (row * cols + col).astype(jnp.uint32)
        counter = pid * np.uint32(block_rows * cols) + idx
        h = _hash_u32(counter, mseed)
        keep = (h & np.uint32(0xFFFF)) >= thr
        xs = x_ref[...].astype(jnp.float32) * scale32
        o_ref[...] = jnp.where(keep, xs, 0.0).astype(o_ref.dtype)


def dropout(x, dropout_p, *, seed=0, training=True):
    """Forward pass of the PyTorch Dropout module (inverted dropout)."""
    assert 0.0 <= dropout_p <= 1.0, "dropout probability has to be between 0 and 1"
    if not training or dropout_p == 0.0:
        return x
    if dropout_p == 1.0:
        return jnp.zeros_like(x)

    orig_shape = x.shape
    total = x.size
    if total == 0:
        return x

    # ---- Lane-dense 2D layout (zero-copy whenever possible) -------------------
    C = None
    for c in (512, 256, 128):
        if total % c == 0:
            C = c
            break
    if C is not None:
        x2 = x.reshape(total // C, C)           # pure reshape: no pad, no extra HBM pass
        padded = False
    else:
        C = _LANE
        rows_r = pl.cdiv(total, C)
        flat = jnp.pad(x.reshape(-1), (0, rows_r * C - total))   # minimal pad (<512 elems)
        x2 = flat.reshape(rows_r, C)
        padded = True

    rows = x2.shape[0]
    itemsize = jnp.dtype(x2.dtype).itemsize

    # dtype-aware tile: ~4 MiB regardless of element size.
    block_rows = max(8, (_TARGET_TILE_BYTES // (C * itemsize)) // 8 * 8)
    if rows <= block_rows:
        block_rows = rows                        # single full-extent block
    grid = pl.cdiv(rows, block_rows)             # partial last block handled by Pallas

    # keep  <=>  hash16 >= round(p * 2^16)   (i.e. uniform > p)
    threshold16 = int(round(float(dropout_p) * 65536.0))
    threshold16 = max(1, min(threshold16, 65535))
    scale = 1.0 / (1.0 - float(dropout_p))

    # Pre-mix the seed on the host (non-linear); pass a 31-bit value via scalar prefetch.
    if isinstance(seed, (int, np.integer)):
        mixed = _mix32_py(int(seed)) & 0x7FFFFFFF
        seed_arr = jnp.asarray([mixed], dtype=jnp.int32)
    else:
        s = jnp.asarray(seed).reshape(()).astype(jnp.uint32)
        s = s ^ (s >> 16)
        s = s * np.uint32(0x7FEB352D)
        s = s ^ (s >> 15)
        s = s * np.uint32(0x846CA68B)
        s = s ^ (s >> 16)
        seed_arr = (s & np.uint32(0x7FFFFFFF)).astype(jnp.int32).reshape(1)

    out = pl.pallas_call(
        functools.partial(
            _dropout_kernel,
            threshold16=threshold16,
            scale=scale,
            block_rows=block_rows,
        ),
        out_shape=jax.ShapeDtypeStruct(x2.shape, x2.dtype),
        grid_spec=pltpu.PrefetchScalarGridSpec(
            num_scalar_prefetch=1,
            grid=(grid,),
            in_specs=[pl.BlockSpec((block_rows, C), lambda i, _seed: (i, 0))],
            out_specs=pl.BlockSpec((block_rows, C), lambda i, _seed: (i, 0)),
        ),
        compiler_params=pltpu.CompilerParams(
            # Tiles are independent (stateless counter-based RNG) so the grid may
            # shard across v7x's two TensorCores; no-op on single-TC v5e/v6e.
            dimension_semantics=("parallel",),
            vmem_limit_bytes=_VMEM_LIMIT_BYTES,
        ),
    )(seed_arr, x2)

    if padded:
        return out.reshape(-1)[:total].reshape(orig_shape)
    return out.reshape(orig_shape)


if __name__ == "__main__":
    key = jax.random.PRNGKey(0)
    # Small MLP-style activation: (batch=8, hidden=256) -> zero-copy C=512 path.
    x = jax.random.normal(key, (8, 256), dtype=jnp.float32)

    p = 0.5
    y = jax.block_until_ready(dropout(x, p, seed=1234, training=True))
    assert y.shape == x.shape and y.dtype == x.dtype

    # Surviving entries are exactly x / (1-p), dropped entries are 0, and roughly
    # (1-p) of entries survive; same seed reproduces the same mask.
    kept = y != 0.0
    scale = 1.0 / (1.0 - p)
    assert jnp.allclose(jnp.where(kept, y, 0.0), jnp.where(kept, x * scale, 0.0),
                        rtol=1e-6, atol=1e-6)
    frac_kept = float(jnp.mean(kept.astype(jnp.float32)))
    assert 0.35 < frac_kept < 0.65, f"unexpected keep fraction {frac_kept}"
    y_again = jax.block_until_ready(dropout(x, p, seed=1234, training=True))
    assert jnp.array_equal(y, y_again)

    # Ragged / non-multiple-of-128 element count exercises the minimal-pad path.
    x2 = jax.random.normal(jax.random.PRNGKey(1), (3, 5, 37), dtype=jnp.float32)
    y2 = jax.block_until_ready(dropout(x2, 0.3, seed=7, training=True))
    kept2 = y2 != 0.0
    assert y2.shape == x2.shape
    assert jnp.allclose(jnp.where(kept2, y2, 0.0), jnp.where(kept2, x2 / 0.7, 0.0),
                        rtol=1e-5, atol=1e-6)

    # bf16: scaling happens in f32 then casts (no systematic bias), dtype-aware tiles.
    xb = jax.random.normal(jax.random.PRNGKey(2), (16, 512), dtype=jnp.float32).astype(jnp.bfloat16)
    yb = jax.block_until_ready(dropout(xb, 0.25, seed=42, training=True))
    keptb = yb != 0
    expected_b = (xb.astype(jnp.float32) * (1.0 / 0.75)).astype(jnp.bfloat16)
    assert jnp.array_equal(jnp.where(keptb, yb, 0), jnp.where(keptb, expected_b, 0))
    fracb = float(jnp.mean(keptb.astype(jnp.float32)))
    assert 0.65 < fracb < 0.85, f"unexpected keep fraction {fracb}"

    # Edge cases handled in the wrapper (match torch exactly).
    y0 = jax.block_until_ready(dropout(x, 0.0, training=True))
    y1 = jax.block_until_ready(dropout(x, 1.0, training=True))
    ye = jax.block_until_ready(dropout(x, 0.7, training=False))
    assert jnp.array_equal(y0, x) and jnp.array_equal(ye, x)
    assert jnp.array_equal(y1, jnp.zeros_like(x))

    print("KERNEL_OK")
</pallas_src>

<mosaic_0001>
module attributes {stable_mosaic.version = 11 : i64} {
  func.func @_dropout_kernel(%arg0: i32, %arg1: memref<1xi32, #tpu.memory_space<smem>>, %arg2: memref<4x512xf32, #tpu.memory_space<vmem>>, %arg3: memref<4x512xf32, #tpu.memory_space<vmem>>) attributes {dimension_semantics = [#tpu.dimension_semantics<parallel>], iteration_bounds = array<i64: 1>, scalar_prefetch = 1 : i64, scratch_operands = 0 : i64, tpu.core_type = #tpu.core_type<tc>, window_params = [{transform_indices = @transform_0, window_bounds = array<i64: 4, 512>}, {transform_indices = @transform_1, window_bounds = array<i64: 4, 512>}]} {
    %c0 = arith.constant 0 : index
    %0 = memref.load %arg1[%c0] : memref<1xi32, #tpu.memory_space<smem>>
    %1 = tpu.iota {dimensions = array<i32: 0>} : vector<4x256xi32>
    %2 = tpu.iota {dimensions = array<i32: 1>} : vector<4x256xi32>
    %c256_i32 = arith.constant 256 : i32
    %3 = vector.broadcast %c256_i32 : i32 to vector<4x256xi32>
    %4 = arith.muli %1, %3 : vector<4x256xi32>
    %5 = arith.addi %4, %2 : vector<4x256xi32>
    %c1024_i32 = arith.constant 1024 : i32
    %6 = arith.muli %arg0, %c1024_i32 : i32
    %7 = vector.broadcast %6 : i32 to vector<4x256xi32>
    %8 = arith.addi %7, %5 : vector<4x256xi32>
    %9 = vector.broadcast %0 : i32 to vector<4x256xi32>
    %10 = arith.xori %8, %9 : vector<4x256xi32>
    %c16_i32 = arith.constant 16 : i32
    %11 = vector.broadcast %c16_i32 : i32 to vector<4x256xi32>
    %12 = arith.shrui %10, %11 : vector<4x256xi32>
    %13 = arith.xori %10, %12 : vector<4x256xi32>
    %c2146121005_i32 = arith.constant 2146121005 : i32
    %14 = vector.broadcast %c2146121005_i32 : i32 to vector<4x256xi32>
    %15 = arith.muli %13, %14 : vector<4x256xi32>
    %c15_i32 = arith.constant 15 : i32
    %16 = vector.broadcast %c15_i32 : i32 to vector<4x256xi32>
    %17 = arith.shrui %15, %16 : vector<4x256xi32>
    %18 = arith.xori %15, %17 : vector<4x256xi32>
    %c-2073254261_i32 = arith.constant -2073254261 : i32
    %19 = vector.broadcast %c-2073254261_i32 : i32 to vector<4x256xi32>
    %20 = arith.muli %18, %19 : vector<4x256xi32>
    %c16_i32_0 = arith.constant 16 : i32
    %21 = vector.broadcast %c16_i32_0 : i32 to vector<4x256xi32>
    %22 = arith.shrui %20, %21 : vector<4x256xi32>
    %23 = arith.xori %20, %22 : vector<4x256xi32>
    %c65535_i32 = arith.constant 65535 : i32
    %24 = vector.broadcast %c65535_i32 : i32 to vector<4x256xi32>
    %25 = arith.andi %23, %24 : vector<4x256xi32>
    %c32768_i32 = arith.constant 32768 : i32
    %26 = vector.broadcast %c32768_i32 : i32 to vector<4x256xi32>
    %27 = arith.cmpi uge, %25, %26 : vector<4x256xi32>
    %c16_i32_1 = arith.constant 16 : i32
    %28 = vector.broadcast %c16_i32_1 : i32 to vector<4x256xi32>
    %29 = arith.shrui %23, %28 : vector<4x256xi32>
    %c32768_i32_2 = arith.constant 32768 : i32
    %30 = vector.broadcast %c32768_i32_2 : i32 to vector<4x256xi32>
    %31 = arith.cmpi uge, %29, %30 : vector<4x256xi32>
    %c0_3 = arith.constant 0 : index
    %c0_4 = arith.constant 0 : index
    %32 = vector.load %arg2[%c0_3, %c0_4] : memref<4x512xf32, #tpu.memory_space<vmem>>, vector<4x256xf32>
    %cst = arith.constant 2.000000e+00 : f32
    %33 = vector.broadcast %cst : f32 to vector<4x256xf32>
    %34 = arith.mulf %32, %33 : vector<4x256xf32>
    %c0_5 = arith.constant 0 : index
    %c256 = arith.constant 256 : index
    %35 = vector.load %arg2[%c0_5, %c256] : memref<4x512xf32, #tpu.memory_space<vmem>>, vector<4x256xf32>
    %cst_6 = arith.constant 2.000000e+00 : f32
    %36 = vector.broadcast %cst_6 : f32 to vector<4x256xf32>
    %37 = arith.mulf %35, %36 : vector<4x256xf32>
    %cst_7 = arith.constant 0.000000e+00 : f32
    %38 = vector.broadcast %cst_7 : f32 to vector<4x256xf32>
    %39 = arith.select %27, %34, %38 : vector<4x256xi1>, vector<4x256xf32>
    %c0_8 = arith.constant 0 : index
    %c0_9 = arith.constant 0 : index
    %40 = vector.load %arg3[%c0_8, %c0_9] : memref<4x512xf32, #tpu.memory_space<vmem>>, vector<4x256xf32>
    tpu.vector_store %arg3[%c0_8, %c0_9], %39 {strides = array<i32>} : memref<4x512xf32, #tpu.memory_space<vmem>>, vector<4x256xf32>,
    %cst_10 = arith.constant 0.000000e+00 : f32
    %41 = vector.broadcast %cst_10 : f32 to vector<4x256xf32>
    %42 = arith.select %31, %37, %41 : vector<4x256xi1>, vector<4x256xf32>
    %c0_11 = arith.constant 0 : index
    %c256_12 = arith.constant 256 : index
    %43 = vector.load %arg3[%c0_11, %c256_12] : memref<4x512xf32, #tpu.memory_space<vmem>>, vector<4x256xf32>
    tpu.vector_store %arg3[%c0_11, %c256_12], %42 {strides = array<i32>} : memref<4x512xf32, #tpu.memory_space<vmem>>, vector<4x256xf32>,
    return
  }
  func.func @transform_0(%arg0: i32, %arg1: memref<1xi32, #tpu.memory_space<smem>>) -> (i32, i32) {
    %c0_i32 = arith.constant 0 : i32
    %c0_i32_0 = arith.constant 0 : i32
    return %arg0, %c0_i32 : i32, i32
  }
  func.func @transform_1(%arg0: i32, %arg1: memref<1xi32, #tpu.memory_space<smem>>) -> (i32, i32) {
    %c0_i32 = arith.constant 0 : i32
    %c0_i32_0 = arith.constant 0 : i32
    return %arg0, %c0_i32 : i32, i32
  }
}

</mosaic_0001>

<bundles_post_ra>
// kernel: tpu_custom_call.1
= control target key start
LH: loop header
LB: loop body
LE: loop exit
PB: predicated region body
PF: predicated region fallthrough
CT: control target
= control target key end

     0   :  { %8 = vsyncpa [#allocation5], 0  ;;  %s207_s0 = inlined_call_operand.<no memory space> [shape: s32[1], index: 0, kind: input, shape index: {}]   ;;  %s208_s1 = inlined_call_operand.hbm [shape: f32[4,512], index: 1, kind: input, shape index: {}]   ;;  %s209_s2 = inlined_call_operand.hbm [shape: f32[4,512], index: 2, kind: output, shape index: {}]  }
   0x1   :  { %9 = vsyncpa [#allocation6], 0  ;;  %s15_s11 = sshll.u32 %s208_s1, 4  ;;  %s181_s12 = smov [#allocation4]   ;;  %s16_s11 = int_to_ptr.hbm [resolvable:$true] %s15_s11 }
   0x2   :  { %s17_s13 = sshll.u32 %s181_s12, 4  ;;  %s18_s13 = int_to_ptr.vmem [resolvable:$true] %s17_s13 }
   0x3   :  { %20 = dma.hbm_to_vmem [thread:$0]  %s16_s11, 256, %s18_s13, [#allocation5]  }
   0x4   :  { %177 = dma.done.wait [#allocation5], 256  }
   0x5   :  { %178 = vsyncadd [#allocation5], 4294967040  ;;  %v26_v0 = vlaneseq  ;;  %v38_v5 = vstv %s207_s0  ;;  %v73_v8 = vld [vmem:[#allocation4] sm:$0xff]  ;;  %v75_v14 = vld [vmem:[#allocation4 + $0x8] sm:$0xff]  ;;  %vm88_vm4 = vcmask 1043456   ;;  %s182_s0 = smov [#allocation7]  }
   0x6   :  { %v74_v9 = vmul.f32 2.0, %v73_v8  ;;  %v76_v17 = vmul.f32 2.0, %v75_v14  ;;  %s111_s1 = sshll.u32 %s182_s0, 4  ;;  %s113_s18 = sshll.u32 %s209_s2, 4  ;;  %s112_s1 = int_to_ptr.vmem [resolvable:$true] %s111_s1  ;;  %s114_s18 = int_to_ptr.hbm [resolvable:$true] %s113_s18 }
   0x7   :  { %v27_v1 = vshrl.u32 %v26_v0, 7  ;;  %v29_v2 = vand.u32 127, %v26_v0 }
   0x8   :  { %78 = vst [vmem:[#allocation1] ss:$2 sm:$0xff] %v74_v9 }
   0x9   :  { %v30_v3 = vadd.s32 128, %v29_v2  ;;  %v31_v4 = vmul.u32 256, %v27_v1 }
   0xb   :  { %v32_v6 = vadd.s32 %v31_v4, %v29_v2  ;;  %v33_v7 = vadd.s32 %v31_v4, %v30_v3 }
   0xd   :  { %v39_v10 = vxor.u32 %v38_v5, %v32_v6  ;;  %v40_v11 = vxor.u32 %v38_v5, %v33_v7 }
   0xf   :  { %v41_v12 = vshrl.u32 %v39_v10, 16  ;;  %v42_v13 = vshrl.u32 %v40_v11, 16  ;;  %v79_v22 = vld.sshfl [vmem:[#allocation1] sm:$0xff pattern:$0x75316420] }
  0x10   :  { %v80_v23 = vld.sshfl [vmem:[#allocation1 + $0x8] sm:$0xff pattern:$0x75316420] }
  0x11   :  { %v43_v15 = vxor.u32 %v41_v12, %v39_v10  ;;  %v44_v16 = vxor.u32 %v42_v13, %v40_v11  ;;  %93 = vst [vmem:[#allocation1] ss:$2 sm:$0xff] %v76_v17 }
  0x13   :  { %v45_v18 = vmul.u32 2146121005, %v43_v15  ;;  %v46_v19 = vmul.u32 2146121005, %v44_v16 }
  0x15   :  { %v47_v20 = vshrl.u32 %v45_v18, 15  ;;  %v48_v21 = vshrl.u32 %v46_v19, 15 }
  0x17   :  { %v49_v24 = vxor.u32 %v47_v20, %v45_v18  ;;  %v50_v25 = vxor.u32 %v48_v21, %v46_v19 }
  0x18   :  { %v95_v36 = vld.sshfl [vmem:[#allocation1 + $0x8] sm:$0xff pattern:$0x75316420]  ;;  %v94_v41 = vld.sshfl [vmem:[#allocation1] sm:$0xff pattern:$0x75316420] }
  0x19   :  { %v51_v26 = vmul.u32 2221713035, %v49_v24  ;;  %v52_v27 = vmul.u32 2221713035, %v50_v25 }
  0x1b   :  { %v53_v28 = vshrl.u32 %v51_v26, 16  ;;  %v54_v29 = vshrl.u32 %v52_v27, 16 }
  0x1d   :  { %v55_v30 = vxor.u32 %v53_v28, %v51_v26  ;;  %v56_v31 = vxor.u32 %v54_v29, %v52_v27 }
  0x1f   :  { %v57_v32 = vand.u32 65535, %v55_v30  ;;  %v58_v33 = vand.u32 65535, %v56_v31  ;;  %v65_v34 = vshrl.u32 %v55_v30, 16  ;;  %v66_v35 = vshrl.u32 %v56_v31, 16 }
  0x21   :  { %v123_v37 = vxor.u32 2147483648, %v57_v32  ;;  %v124_v38 = vxor.u32 2147483648, %v58_v33  ;;  %v125_v39 = vxor.u32 2147483648, %v65_v34  ;;  %v126_v40 = vxor.u32 2147483648, %v66_v35 }
  0x23   :  { %vm61_vm0 = vcmp.ge.s32.totalorder %v123_v37, 2147516416  ;;  %vm64_vm1 = vcmp.ge.s32.totalorder %v124_v38, 2147516416  ;;  %vm69_vm2 = vcmp.ge.s32.totalorder %v125_v39, 2147516416  ;;  %vm72_vm3 = vcmp.ge.s32.totalorder %v126_v40, 2147516416 }
  0x24   :  { %v84_v42 = vsel %vm64_vm1, %v80_v23, 0.0  ;;  %v99_v43 = vsel %vm72_vm3, %v95_v36, 0.0  ;;  %v83_v46 = vsel %vm61_vm0, %v79_v22, 0.0  ;;  %v98_v47 = vsel %vm69_vm2, %v94_v41, 0.0 }
  0x25   :  { %v87_v44 = vrot.slane %v84_v42, 4  ;;  %v102_v45 = vrot.slane %v99_v43, 4 }
  0x27   :  { %v89_v48 = vsel %vm88_vm4, %v83_v46, %v87_v44  ;;  %v103_v49 = vsel %vm88_vm4, %v98_v47, %v102_v45 }
  0x28   :  { %91 = vst [vmem:[#allocation7] sm:$0xff] %v89_v48 }
  0x29   :  { %105 = vst [vmem:[#allocation7 + $0x8] sm:$0xff] %v103_v49 }
  0x2a   :  { %116 = dma.vmem_to_hbm [thread:$0]  %s112_s1, 256, %s114_s18, [#allocation6]  }
  0x2b   :  { %179 = dma.done.wait [#allocation6], 256  }
  0x2c   :  { %180 = vsyncadd [#allocation6], 4294967040 }
  0x2d   :  { %121 = vsyncpa [#allocation5], 1 }
  0x2e   :  { %122 = vsyncpa [#allocation6], 1 }

</bundles_post_ra>
